<compile_context>
chip_gen: v7x
topology: tpu7x:2x2x1
jax: 0.10.0
libtpu: 0.0.40
codegen_flags: <defaults>
</compile_context>

<pallas_src>
import jax
import jax.numpy as jnp
from jax.experimental import pallas as pl
from jax.experimental.pallas import tpu as pltpu

HIDDEN = 120   # logical hidden width of the module
HPAD = 128     # hidden width padded to a full lane width
OPAD = 128     # output width padded to a full lane width (lane-dense store)
NEG_BIG = -1e30  # padded-output-lane bias -> exp underflows to 0 in softmax


def qnet_kernel(x_ref, w1_ref, b1_ref, w4_ref, b4_ref, o_ref):
    # x: (TB, F) f32 | w1: (F, HPAD) bf16 | b1: (1, HPAD) f32
    # w4: (HPAD, OPAD) bf16 | b4: (1, OPAD) f32 | o: (TB, OPAD) f32
    x = x_ref[...].astype(jnp.bfloat16)

    # linear1 + ReLU  (bf16 MXU operands, f32 accumulate; bias/ReLU in f32)
    h = jnp.dot(x, w1_ref[...], preferred_element_type=jnp.float32) + b1_ref[...]
    h = jnp.maximum(h, 0.0)

    # dropout(p=0.15): identity at inference time.

    # linear4. Padded hidden cols are zero (contribute nothing); padded output lanes carry a
    # -1e30 bias so they vanish under softmax without any in-kernel masking.
    logits = jnp.dot(h.astype(jnp.bfloat16), w4_ref[...],
                     preferred_element_type=jnp.float32) + b4_ref[...]

    # Numerically stable softmax over the lane axis (padded lanes -> exp underflows to 0).
    m = jnp.max(logits, axis=-1, keepdims=True)
    e = jnp.exp(logits - m)
    denom = jnp.sum(e, axis=-1, keepdims=True)
    o_ref[...] = (e * pl.reciprocal(denom, approx=True)).astype(o_ref.dtype)


def prepare_params(w1, b1, w4, b4):
    """One-time re-layout from torch-style params to kernel layout (done at init, not per call).

    w1: (120, F), b1: (120,), w4: (O, 120), b4: (O,)  ->
    w1k: (F, 128) bf16, b1k: (1, 128) f32, w4k: (128, 128) bf16, b4k: (1, 128) f32
    Weight padding is zero; padded output-lane biases are set to -1e30 so softmax kills them
    without any per-call masking work in the kernel.
    """
    f = w1.shape[1]
    o = w4.shape[0]
    w1k = jnp.zeros((f, HPAD), jnp.bfloat16).at[:, :HIDDEN].set(w1.T.astype(jnp.bfloat16))
    b1k = jnp.zeros((1, HPAD), jnp.float32).at[:, :HIDDEN].set(b1.reshape(1, HIDDEN))
    w4k = jnp.zeros((HPAD, OPAD), jnp.bfloat16).at[:HIDDEN, :o].set(w4.T.astype(jnp.bfloat16))
    b4k = jnp.full((1, OPAD), NEG_BIG, jnp.float32).at[:, :o].set(b4.reshape(1, o))
    return w1k, b1k, w4k, b4k


def linear_qnet_forward(x, params, out_size, *, row_tile=512):
    """x: (B, F) f32; params from prepare_params(); returns (B, out_size) softmax probs."""
    w1k, b1k, w4k, b4k = params
    B, F = x.shape

    # Batch tiling: whole (8-rounded) batch when small, large pipelined tiles when big.
    # Note for v7x: halve row_tile if the double-buffered (tile,128) f32 out block plus x blocks
    # approaches the 32 MiB scoped-VMEM default (64 MiB physical per TC).
    if B <= row_tile:
        tb = max(8, ((B + 7) // 8) * 8)
    else:
        tb = row_tile
    b_pad = ((B + tb - 1) // tb) * tb
    if b_pad != B:
        x = jnp.pad(x, ((0, b_pad - B), (0, 0)))

    out = pl.pallas_call(
        qnet_kernel,
        out_shape=jax.ShapeDtypeStruct((b_pad, OPAD), jnp.float32),
        grid=(b_pad // tb,),
        in_specs=[
            pl.BlockSpec((tb, F), lambda i: (i, 0)),       # x: pipelined over batch tiles
            pl.BlockSpec((F, HPAD), lambda i: (0, 0)),     # w1: resident
            pl.BlockSpec((1, HPAD), lambda i: (0, 0)),     # b1: resident
            pl.BlockSpec((HPAD, OPAD), lambda i: (0, 0)),  # w4: resident
            pl.BlockSpec((1, OPAD), lambda i: (0, 0)),     # b4: resident
        ],
        out_specs=pl.BlockSpec((tb, OPAD), lambda i: (i, 0)),
        compiler_params=pltpu.CompilerParams(dimension_semantics=("parallel",)),
    )(x, w1k, b1k, w4k, b4k)

    # Lane-dense kernel output; slice back to the logical shape outside the kernel.
    return out[:B, :out_size]


def init_params(key, input_size, output_size):
    """Deterministic init mimicking torch.nn.Linear default: U(-1/sqrt(fan_in), 1/sqrt(fan_in))."""
    k1, k2, k3, k4 = jax.random.split(key, 4)
    bound1 = 1.0 / jnp.sqrt(jnp.float32(input_size))
    bound4 = 1.0 / jnp.sqrt(jnp.float32(HIDDEN))
    w1 = jax.random.uniform(k1, (HIDDEN, input_size), jnp.float32, -bound1, bound1)
    b1 = jax.random.uniform(k2, (HIDDEN,), jnp.float32, -bound1, bound1)
    w4 = jax.random.uniform(k3, (output_size, HIDDEN), jnp.float32, -bound4, bound4)
    b4 = jax.random.uniform(k4, (output_size,), jnp.float32, -bound4, bound4)
    return w1, b1, w4, b4


if __name__ == "__main__":
    import functools

    key = jax.random.PRNGKey(0)
    batch = 8
    input_size = 11    # typical snake-game DQN state size
    output_size = 3    # typical action count

    kx, kp = jax.random.split(key)
    x = jax.random.normal(kx, (batch, input_size), jnp.float32)
    w1, b1, w4, b4 = init_params(kp, input_size, output_size)

    # Hoisted one-time param re-layout (NOT on the per-forward hot path).
    params = prepare_params(w1, b1, w4, b4)

    fwd = jax.jit(functools.partial(linear_qnet_forward, out_size=output_size))
    out = jax.block_until_ready(fwd(x, params))

    # Pure-JAX f32 reference of the module's forward (eval mode).
    h_ref = jnp.maximum(x @ w1.T + b1, 0.0)
    ref = jax.nn.softmax(h_ref @ w4.T + b4, axis=-1)

    assert out.shape == (batch, output_size)
    assert jnp.allclose(jnp.sum(out, axis=-1), 1.0, atol=1e-2)
    assert jnp.allclose(out, ref, atol=5e-2)

    print("KERNEL_OK")
</pallas_src>

<mosaic_0001>
module attributes {stable_mosaic.version = 11 : i64} {
  func.func @qnet_kernel(%arg0: i32, %arg1: memref<8x11xf32, #tpu.memory_space<vmem>>, %arg2: memref<11x128xbf16, #tpu.memory_space<vmem>>, %arg3: memref<1x128xf32, #tpu.memory_space<vmem>>, %arg4: memref<128x128xbf16, #tpu.memory_space<vmem>>, %arg5: memref<1x128xf32, #tpu.memory_space<vmem>>, %arg6: memref<8x128xf32, #tpu.memory_space<vmem>>) attributes {dimension_semantics = [#tpu.dimension_semantics<parallel>], iteration_bounds = array<i64: 1>, scalar_prefetch = 0 : i64, scratch_operands = 0 : i64, tpu.core_type = #tpu.core_type<tc>, window_params = [{transform_indices = @transform_0, window_bounds = array<i64: 8, 11>}, {pipeline_mode = #tpu.pipeline_mode<synchronous>, transform_indices = @transform_1, window_bounds = array<i64: 11, 128>}, {pipeline_mode = #tpu.pipeline_mode<synchronous>, transform_indices = @transform_2, window_bounds = array<i64: 1, 128>}, {pipeline_mode = #tpu.pipeline_mode<synchronous>, transform_indices = @transform_3, window_bounds = array<i64: 128, 128>}, {pipeline_mode = #tpu.pipeline_mode<synchronous>, transform_indices = @transform_4, window_bounds = array<i64: 1, 128>}, {transform_indices = @transform_5, window_bounds = array<i64: 8, 128>}]} {
    %c0 = arith.constant 0 : index
    %c0_0 = arith.constant 0 : index
    %0 = vector.load %arg1[%c0, %c0_0] : memref<8x11xf32, #tpu.memory_space<vmem>>, vector<8x11xf32>
    %1 = arith.truncf %0 : vector<8x11xf32> to vector<8x11xbf16>
    %c0_1 = arith.constant 0 : index
    %c0_2 = arith.constant 0 : index
    %2 = vector.load %arg2[%c0_1, %c0_2] : memref<11x128xbf16, #tpu.memory_space<vmem>>, vector<11x128xbf16>
    %cst = arith.constant dense<0.000000e+00> : vector<8x128xf32>
    %3 = tpu.matmul %1, %2, %cst {dimension_numbers = #tpu.dot_dimension_numbers<[1], [0], [0], [1], [0, 0, 1, 1], [], []>} : vector<8x11xbf16>, vector<11x128xbf16>, vector<8x128xf32> -> vector<8x128xf32>
    %c0_3 = arith.constant 0 : index
    %c0_4 = arith.constant 0 : index
    %4 = vector.load %arg3[%c0_3, %c0_4] : memref<1x128xf32, #tpu.memory_space<vmem>>, vector<1x128xf32>
    %5 = vector.broadcast %4 : vector<1x128xf32> to vector<8x128xf32>
    %6 = arith.addf %3, %5 : vector<8x128xf32>
    %cst_5 = arith.constant 0.000000e+00 : f32
    %7 = vector.broadcast %cst_5 : f32 to vector<8x128xf32>
    %8 = arith.maximumf %6, %7 : vector<8x128xf32>
    %9 = arith.truncf %8 : vector<8x128xf32> to vector<8x128xbf16>
    %c0_6 = arith.constant 0 : index
    %c0_7 = arith.constant 0 : index
    %10 = vector.load %arg4[%c0_6, %c0_7] : memref<128x128xbf16, #tpu.memory_space<vmem>>, vector<128x128xbf16>
    %cst_8 = arith.constant dense<0.000000e+00> : vector<8x128xf32>
    %11 = tpu.matmul %9, %10, %cst_8 {dimension_numbers = #tpu.dot_dimension_numbers<[1], [0], [0], [1], [0, 0, 1, 1], [], []>} : vector<8x128xbf16>, vector<128x128xbf16>, vector<8x128xf32> -> vector<8x128xf32>
    %c0_9 = arith.constant 0 : index
    %c0_10 = arith.constant 0 : index
    %12 = vector.load %arg5[%c0_9, %c0_10] : memref<1x128xf32, #tpu.memory_space<vmem>>, vector<1x128xf32>
    %13 = vector.broadcast %12 : vector<1x128xf32> to vector<8x128xf32>
    %14 = arith.addf %11, %13 : vector<8x128xf32>
    %cst_11 = arith.constant dense<0xFF800000> : vector<8xf32>
    %15 = vector.multi_reduction <maximumf>, %14, %cst_11 [1] : vector<8x128xf32> to vector<8xf32>
    %16 = vector.shape_cast %15 : vector<8xf32> to vector<8x1xf32>
    %17 = vector.broadcast %16 : vector<8x1xf32> to vector<8x128xf32>
    %18 = arith.subf %14, %17 : vector<8x128xf32>
    %19 = math.exp %18 : vector<8x128xf32>
    %cst_12 = arith.constant dense<0.000000e+00> : vector<8xf32>
    %20 = vector.multi_reduction <add>, %19, %cst_12 [1] : vector<8x128xf32> to vector<8xf32>
    %21 = vector.shape_cast %20 : vector<8xf32> to vector<8x1xf32>
    %22 = tpu.reciprocal %21 {approx = true} : vector<8x1xf32> -> vector<8x1xf32>
    %23 = vector.broadcast %22 : vector<8x1xf32> to vector<8x128xf32>
    %24 = arith.mulf %19, %23 : vector<8x128xf32>
    %c0_13 = arith.constant 0 : index
    %c0_14 = arith.constant 0 : index
    %25 = vector.load %arg6[%c0_13, %c0_14] : memref<8x128xf32, #tpu.memory_space<vmem>>, vector<8x128xf32>
    tpu.vector_store %arg6[%c0_13, %c0_14], %24 {strides = array<i32>} : memref<8x128xf32, #tpu.memory_space<vmem>>, vector<8x128xf32>,
    return
  }
  func.func @transform_0(%arg0: i32) -> (i32, i32) {
    %c0_i32 = arith.constant 0 : i32
    %c0_i32_0 = arith.constant 0 : i32
    return %arg0, %c0_i32 : i32, i32
  }
  func.func @transform_1(%arg0: i32) -> (i32, i32) {
    %c0_i32 = arith.constant 0 : i32
    %c0_i32_0 = arith.constant 0 : i32
    %c0_i32_1 = arith.constant 0 : i32
    return %c0_i32, %c0_i32_0 : i32, i32
  }
  func.func @transform_2(%arg0: i32) -> (i32, i32) {
    %c0_i32 = arith.constant 0 : i32
    %c0_i32_0 = arith.constant 0 : i32
    %c0_i32_1 = arith.constant 0 : i32
    return %c0_i32, %c0_i32_0 : i32, i32
  }
  func.func @transform_3(%arg0: i32) -> (i32, i32) {
    %c0_i32 = arith.constant 0 : i32
    %c0_i32_0 = arith.constant 0 : i32
    %c0_i32_1 = arith.constant 0 : i32
    return %c0_i32, %c0_i32_0 : i32, i32
  }
  func.func @transform_4(%arg0: i32) -> (i32, i32) {
    %c0_i32 = arith.constant 0 : i32
    %c0_i32_0 = arith.constant 0 : i32
    %c0_i32_1 = arith.constant 0 : i32
    return %c0_i32, %c0_i32_0 : i32, i32
  }
  func.func @transform_5(%arg0: i32) -> (i32, i32) {
    %c0_i32 = arith.constant 0 : i32
    %c0_i32_0 = arith.constant 0 : i32
    return %arg0, %c0_i32 : i32, i32
  }
}

</mosaic_0001>

<bundles_post_ra>
// kernel: linear_qnet_forward.1
= control target key start
LH: loop header
LB: loop body
LE: loop exit
PB: predicated region body
PF: predicated region fallthrough
CT: control target
= control target key end

     0   :  { %10 = vsyncpa [#allocation3], 0  ;;  %s485_s0 = inlined_call_operand.hbm [shape: f32[8,11], index: 0, kind: input, shape index: {}]   ;;  %s486_s1 = inlined_call_operand.hbm [shape: bf16[11,128], index: 1, kind: input, shape index: {}]   ;;  %s487_s2 = inlined_call_operand.vmem [shape: f32[1,128], index: 2, kind: input, shape index: {}]   ;;  %s488_s3 = inlined_call_operand.hbm [shape: bf16[128,128], index: 3, kind: input, shape index: {}]   ;;  %s489_s4 = inlined_call_operand.vmem [shape: f32[1,128], index: 4, kind: input, shape index: {}]   ;;  %s490_s5 = inlined_call_operand.vmem [shape: f32[8,128], index: 5, kind: output, shape index: {}]  }
   0x1   :  { %11 = vsyncpa [#allocation5], 0  ;;  %s396_s18 = smov [#allocation4]   ;;  %s326_s22 = scalar_lea.hbm %s486_s1, 128 }
   0x2   :  { %s27_s19 = sshll.u32 %s396_s18, 4  ;;  %p327_p0 = scmp.ne.s32.totalorder %s486_s1, %s326_s22  ;;  %s28_s19 = int_to_ptr.vmem [resolvable:$true] %s27_s19 }
   0x3   :  { %p330_p1 = scmp.lt.u32.totalorder %s326_s22, %s486_s1 }
   0x5   :  { %p332_p2 = pnand %p330_p1, %p327_p0 }
   0x7   :  { %335 = shalt.err (!%p332_p2)
}
   0x8   :  { %s336_s27 = scalar_lea.vmem %s28_s19, 128  ;;  %p341_p4 = scmp.lt.s32.totalorder %s28_s19, %s28_s19 }
   0x9   :  { %p337_p3 = scmp.ne.s32.totalorder %s28_s19, %s336_s27  ;;  %p342_p5 = scmp.lt.s32.totalorder %s336_s27, %s336_s27 }
   0xb   :  { %p343_p6 = por %p342_p5, %p341_p4 }
   0xd   :  { %p344_p7 = pnand %p343_p6, %p337_p3 }
   0xf   :  { %347 = shalt.err (!%p344_p7)
}
  0x10   :  { %s397_s28 = smov 64   ;;  %s398_s29 = smov 4  }
  0x11   :  { %33 = dma.hbm_to_vmem [thread:$0]  %s486_s1, 128, %s28_s19, [#allocation5], %s397_s28, %s397_s28, %s398_s29  }
  0x12   :  { %s399_s7 = smov [#allocation2]   ;;  %s400_s9 = smov [#allocation6]  }
  0x13   :  { %s18_s8 = sshll.u32 %s399_s7, 4  ;;  %s41_s10 = sshll.u32 %s400_s9, 4  ;;  %s19_s8 = int_to_ptr.vmem [resolvable:$true] %s18_s8  ;;  %s42_s10 = int_to_ptr.vmem [resolvable:$true] %s41_s10 }
  0x14   :  { %s348_s13 = scalar_lea.hbm %s485_s0, 128 }
  0x15   :  { %p349_p8 = scmp.ne.s32.totalorder %s485_s0, %s348_s13  ;;  %p352_p9 = scmp.lt.u32.totalorder %s348_s13, %s485_s0 }
  0x17   :  { %p354_p10 = pnand %p352_p9, %p349_p8 }
  0x19   :  { %357 = shalt.err (!%p354_p10)
}
  0x1a   :  { %s358_s1 = scalar_lea.vmem %s19_s8, 128  ;;  %p363_p12 = scmp.lt.s32.totalorder %s19_s8, %s19_s8 }
  0x1b   :  { %p359_p11 = scmp.ne.s32.totalorder %s19_s8, %s358_s1  ;;  %p364_p13 = scmp.lt.s32.totalorder %s358_s1, %s358_s1 }
  0x1d   :  { %p365_p0 = por %p364_p13, %p363_p12 }
  0x1f   :  { %p366_p1 = pnand %p365_p0, %p359_p11 }
  0x21   :  { %369 = shalt.err (!%p366_p1)
}
  0x22   :  { %21 = dma.hbm_to_vmem [thread:$0]  %s485_s0, 128, %s19_s8, [#allocation3]  }
  0x23   :  { %s370_s22 = scalar_lea.hbm %s488_s3, 1024 }
  0x24   :  { %p371_p2 = scmp.ne.s32.totalorder %s488_s3, %s370_s22  ;;  %p374_p3 = scmp.lt.u32.totalorder %s370_s22, %s488_s3 }
  0x26   :  { %p376_p4 = pnand %p374_p3, %p371_p2 }
  0x28   :  { %379 = shalt.err (!%p376_p4)
}
  0x29   :  { %s380_s27 = scalar_lea.vmem %s42_s10, 1024  ;;  %p385_p6 = scmp.lt.s32.totalorder %s42_s10, %s42_s10 }
  0x2a   :  { %p381_p5 = scmp.ne.s32.totalorder %s42_s10, %s380_s27  ;;  %p386_p7 = scmp.lt.s32.totalorder %s380_s27, %s380_s27 }
  0x2c   :  { %p387_p8 = por %p386_p7, %p385_p6 }
  0x2e   :  { %p388_p9 = pnand %p387_p8, %p381_p5 }
  0x30   :  { %391 = shalt.err (!%p388_p9)
}
  0x31   :  { %47 = dma.hbm_to_vmem [thread:$0]  %s488_s3, 1024, %s42_s10, [#allocation5], %s397_s28, %s397_s28, %s398_s29  }
  0x32   :  { %392 = dma.done.wait [#allocation3], 128  }
  0x33   :  { %393 = vsyncadd [#allocation3], 4294967168 }
  0x34   :  { %394 = dma.done.wait [#allocation5], 1152  }
  0x35   :  { %395 = vsyncadd [#allocation5], 4294966144  ;;  %vm80_vm0 = vcmask 1044480   ;;  %v401_v0 = vmov 0.0   ;;  %vm402_vm1 = vmmov 0   ;;  %vm81_vm2 = vcmask 1045504  }
  0x36   :  { %279 = vmatprep.subr.bf16.mxu0 %v401_v0  ;;  %285 = vmatprep.subr.bf16.mxu1 %v401_v0  ;;  %v403_v1 = vmov 65535   ;;  %v313_v4 = vld [vmem:[#allocation4] sm:$0x3f]   ;;  %v60_v5 = vld [vmem:[#allocation2] sm:$0xff]  ;;  %v314_v7 = vld [vmem:[#allocation6] sm:$0xff]   ;;  %vm76_vm3 = vcmask 89088  }
  0x37   :  { %281 = vmatprep.mubr.msk.bf16.mxu0 %vm402_vm1, %v401_v0  ;;  %301 = vmatprep.mubr.msk.bf16.mxu1 %vm402_vm1, %v401_v0  ;;  %v82_v2 = vsel %vm80_vm0, 4294967295, %v403_v1  ;;  %v61_v8 = vpack.c.bf16 %v60_v5, %v60_v5  ;;  %v315_v9 = vld [vmem:[#allocation6 + $0x8] sm:$0xff]   ;;  %v316_v10 = vld [vmem:[#allocation6 + $0x10] sm:$0xff]   ;;  %v317_v11 = vld [vmem:[#allocation6 + $0x18] sm:$0xff]  }
  0x38   :  { %v83_v3 = vsel %vm81_vm2, %v82_v2, 0  ;;  %286 = vmatpush3.bf16.msra.mxu1 %v314_v7  ;;  %v318_v12 = vld [vmem:[#allocation6 + $0x20] sm:$0xff]   ;;  %v319_v13 = vld [vmem:[#allocation6 + $0x28] sm:$0xff]   ;;  %v320_v14 = vld [vmem:[#allocation6 + $0x30] sm:$0xff]  }
  0x39   :  { %v85_v6 = vand.u32 %v313_v4, %v83_v3  ;;  %287 = vmatprep.subr.bf16.mxu1 %v401_v0  ;;  %v321_v15 = vld [vmem:[#allocation6 + $0x38] sm:$0xff]   ;;  %v256_v16 = vld [vmem:[%s487_s2] ss:$0 sm:$0xff] }
  0x3a   :  { %v259_v24 = vld [vmem:[%s489_s4] ss:$0 sm:$0xff] }
  0x3b   :  { %280 = vmatpush3.bf16.msra.mxu0 %v85_v6 }
  0x3c   :  { %288 = vmatpush3.bf16.msra.mxu1 %v315_v9 }
  0x3d   :  { %289 = vmatprep.subr.bf16.mxu1 %v401_v0 }
  0x3e   :  { %282 = vmatmul.mubr.msk.bf16.vlgmr.msra.gmra.mrb[0].mxu0 %vm76_vm3, %v61_v8 }
  0x40   :  { %290 = vmatpush3.bf16.msra.mxu1 %v316_v10 }
  0x41   :  { %291 = vmatprep.subr.bf16.mxu1 %v401_v0 }
  0x44   :  { %292 = vmatpush3.bf16.msra.mxu1 %v317_v11 }
  0x45   :  { %293 = vmatprep.subr.bf16.mxu1 %v401_v0 }
  0x48   :  { %294 = vmatpush3.bf16.msra.mxu1 %v318_v12 }
  0x49   :  { %295 = vmatprep.subr.bf16.mxu1 %v401_v0 }
  0x4c   :  { %296 = vmatpush3.bf16.msra.mxu1 %v319_v13 }
  0x4d   :  { %297 = vmatprep.subr.bf16.mxu1 %v401_v0 }
  0x50   :  { %298 = vmatpush3.bf16.msra.mxu1 %v320_v14 }
  0x51   :  { %299 = vmatprep.subr.bf16.mxu1 %v401_v0 }
  0x54   :  { %300 = vmatpush3.bf16.msra.mxu1 %v321_v15 }
 0x111   :  { %v121_v17 = vpop.f32.mrb[0].mxu0 }
 0x112   :  { %v122_v18 = vadd.f32 %v256_v16, %v121_v17  ;;  %v283_v19 = vpop.f32.mrb[1].mxu0 }
 0x113   :  { %v124_v20 = vpop.f32.mrb[2].mxu0 }
 0x114   :  { %v127_v21 = vmax.f32 %v122_v18, 0.0  ;;  %v284_v22 = vpop.f32.mrb[3].mxu0 }
 0x116   :  { %v128_v23 = vpack.c.bf16 %v127_v21, %v127_v21 }
 0x118   :  { %302 = vmatmul.mubr.bf16.vlgmr.msra.gmra.mrb[0].mxu1 %v128_v23 }
 0x1eb   :  { %v234_v25 = vpop.f32.mrb[0].mxu1 }
 0x1ec   :  { %v235_v26 = vadd.f32 %v259_v24, %v234_v25  ;;  %v303_v27 = vpop.f32.mrb[1].mxu1 }
 0x1ed   :  { %v237_v28 = vpop.f32.mrb[2].mxu1 }
 0x1ee   :  { %240 = vmax.xlane.f32.xlu0 %v235_v26  ;;  %v304_v29 = vpop.f32.mrb[3].mxu1 }
 0x27b   :  { %v241_v30 = vpop.xlane.xlu0 %240 }
 0x27c   :  { %v242_v31 = vsub.f32 %v235_v26, %v241_v30 }
 0x27e   :  { %v243_v32 = vmul.f32 1.442695, %v242_v31 }
 0x280   :  { %322 = vpow2.f32 %v243_v32 }
 0x28a   :  { %v323_v33 = vpop.eup %322 }
 0x28b   :  { %245 = vadd.xlane.f32.xlu0 %v323_v33 }
 0x318   :  { %v246_v34 = vpop.xlane.xlu0 %245 }
 0x319   :  { %324 = vrcp.f32 %v246_v34 }
 0x323   :  { %v325_v35 = vpop.eup %324 }
 0x324   :  { %v248_v36 = vmul.f32 %v325_v35, %v323_v33 }
 0x326   :  { %249 = vst [vmem:[%s490_s5] sm:$0xff] %v248_v36 }
 0x327   :  { %254 = vsyncpa [#allocation3], 1 }
 0x328   :  { %255 = vsyncpa [#allocation5], 1 }

</bundles_post_ra>
